<compile_context>
chip_gen: v6e
topology: v6e:2x2x1
jax: 0.10.0
libtpu: 0.0.40
codegen_flags: <defaults>
</compile_context>

<pallas_src>
import jax
import jax.numpy as jnp
import numpy as np
from jax.experimental import pallas as pl
from jax.experimental.pallas import tpu as pltpu

BN_EPS = 1e-5
_LANE = 128
_SUBLANE = 8
_TM_MAX = 512                       # M-tile rows; v7x-safe (64 MiB VMEM)
_VMEM_LIMIT = 32 * 1024 * 1024      # explicit scoped-VMEM limit with headroom


def _round_up(x, m):
    return (x + m - 1) // m * m


# --------------------------------------------------------------------------
# Phase 1: conv matmul + bias; emit bf16 conv tile + per-tile channel partials
# --------------------------------------------------------------------------
def _make_conv_stats_kernel(tm, m_valid, cp):
    def kernel(p_ref, w_ref, b_ref, conv_ref, stats_ref):
        # p_ref:(tm, K*C_in) bf16   w_ref:(K*C_in, cp) bf16   b_ref:(1, cp) f32
        # conv_ref:(tm, cp) bf16    stats_ref:(8, cp) f32 (row0=sum, row1=sumsq)
        acc = jnp.dot(p_ref[...], w_ref[...], preferred_element_type=jnp.float32)
        acc = acc + b_ref[...]
        conv_ref[...] = acc.astype(conv_ref.dtype)

        # Mask rows that are zero-padding of the M dimension so the BatchNorm
        # statistics run exactly over the true N*L_out samples.
        row = pl.program_id(0) * tm + jax.lax.broadcasted_iota(jnp.int32, (tm, 1), 0)
        valid = (row < m_valid).astype(jnp.float32)
        masked = acc * valid
        ssum = jnp.sum(masked, axis=0, keepdims=True)          # (1, cp)
        ssq = jnp.sum(masked * acc, axis=0, keepdims=True)     # acc^2 * valid
        stats_ref[...] = jnp.concatenate(
            [ssum, ssq, jnp.zeros((_SUBLANE - 2, cp), jnp.float32)], axis=0)

    return kernel


# --------------------------------------------------------------------------
# Phase 2: y = conv * scale + shift ; ReLU   (scale/shift fold BN gamma/beta)
# --------------------------------------------------------------------------
def _bn_relu_kernel(conv_ref, scale_ref, shift_ref, out_ref):
    y = conv_ref[...].astype(jnp.float32) * scale_ref[...] + shift_ref[...]
    out_ref[...] = jnp.maximum(y, 0.0).astype(out_ref.dtype)


# --------------------------------------------------------------------------
# Wrapper glue
# --------------------------------------------------------------------------
def _im2col_nlc(x_nlc, k, stride, pad):
    """x: (N, L, C) channels-last -> patches (N*L_out, k*C); col = tap*C + ci."""
    N, L, C = x_nlc.shape
    xp = jnp.pad(x_nlc, ((0, 0), (pad, pad), (0, 0)))
    L_out = (L + 2 * pad - k) // stride + 1
    idx = jnp.arange(L_out)[:, None] * stride + jnp.arange(k)[None, :]   # (L_out, k)
    patches = xp[:, idx, :]                                              # (N, L_out, k, C)
    return patches.reshape(N * L_out, k * C), L_out


def conv_block_forward_nlc(x_nlc, p, out_dtype=jnp.bfloat16):
    """One ConvBlock on channels-last input: (N, L, C_in) -> (N, L_out, C_out)."""
    N, L, C_in = x_nlc.shape
    w = p["w"]
    C_out, _, K = w.shape
    stride, pad = p["stride"], p["pad"]

    patches, L_out = _im2col_nlc(x_nlc.astype(jnp.bfloat16), K, stride, pad)
    M = N * L_out
    Kc = K * C_in
    Cp = _round_up(C_out, _LANE)                     # lane-dense output channels
    TM = min(_TM_MAX, _round_up(M, _SUBLANE))
    M_pad = _round_up(M, TM)
    G = M_pad // TM
    if M_pad > M:
        patches = jnp.pad(patches, ((0, M_pad - M), (0, 0)))

    wmat = jnp.transpose(w, (2, 1, 0)).reshape(Kc, C_out)        # rows: tap*C_in + ci
    wmat = jnp.pad(wmat, ((0, 0), (0, Cp - C_out))).astype(jnp.bfloat16)
    bias = jnp.pad(p["b"], (0, Cp - C_out)).reshape(1, Cp).astype(jnp.float32)

    cparams = pltpu.CompilerParams(
        dimension_semantics=("parallel",),           # M tiles shard across v7x TCs
        vmem_limit_bytes=_VMEM_LIMIT)

    # --- phase 1: conv + per-tile BN partial sums ---
    conv, stats = pl.pallas_call(
        _make_conv_stats_kernel(TM, M, Cp),
        grid=(G,),
        out_shape=(jax.ShapeDtypeStruct((M_pad, Cp), jnp.bfloat16),
                   jax.ShapeDtypeStruct((G * _SUBLANE, Cp), jnp.float32)),
        in_specs=[pl.BlockSpec((TM, Kc), lambda i: (i, 0)),
                  pl.BlockSpec((Kc, Cp), lambda i: (0, 0)),
                  pl.BlockSpec((1, Cp), lambda i: (0, 0))],
        out_specs=(pl.BlockSpec((TM, Cp), lambda i: (i, 0)),
                   pl.BlockSpec((_SUBLANE, Cp), lambda i: (i, 0))),
        compiler_params=cparams,
    )(patches, wmat, bias)

    # --- global BN statistics (tiny per-channel reduction, plain JAX, f32) ---
    stats3 = stats.reshape(G, _SUBLANE, Cp)
    ch_sum = jnp.sum(stats3[:, 0, :], axis=0)
    ch_sqsum = jnp.sum(stats3[:, 1, :], axis=0)
    mean = ch_sum / M
    var = jnp.maximum(ch_sqsum / M - mean * mean, 0.0)           # biased variance
    inv_std = jax.lax.rsqrt(var + BN_EPS)
    gamma = jnp.pad(p["gamma"], (0, Cp - C_out))
    beta = jnp.pad(p["beta"], (0, Cp - C_out))
    scale = (gamma * inv_std).reshape(1, Cp).astype(jnp.float32)
    shift = (beta - mean * gamma * inv_std).reshape(1, Cp).astype(jnp.float32)

    # --- phase 2: normalize + ReLU ---
    act = pl.pallas_call(
        _bn_relu_kernel,
        grid=(G,),
        out_shape=jax.ShapeDtypeStruct((M_pad, Cp), out_dtype),
        in_specs=[pl.BlockSpec((TM, Cp), lambda i: (i, 0)),
                  pl.BlockSpec((1, Cp), lambda i: (0, 0)),
                  pl.BlockSpec((1, Cp), lambda i: (0, 0))],
        out_specs=pl.BlockSpec((TM, Cp), lambda i: (i, 0)),
        compiler_params=cparams,
    )(conv, scale, shift)

    return act[:M, :C_out].reshape(N, L_out, C_out)


def conv_encoder_forward(x_ncl, params):
    """Full encoder. x: (N, C_in, L) NCL like PyTorch -> (N, C_out, L_final)."""
    x_nlc = jnp.transpose(x_ncl, (0, 2, 1))
    n_layers = len(params)
    for li, p in enumerate(params):
        last = li == n_layers - 1
        x_nlc = conv_block_forward_nlc(
            x_nlc, p, out_dtype=jnp.float32 if last else jnp.bfloat16)
    return jnp.transpose(x_nlc, (0, 2, 1))


# --------------------------------------------------------------------------
# Parameter init (matches module shapes / defaults) and pure-JAX reference
# --------------------------------------------------------------------------
def init_conv_encoder(key, in_channels, kernel_sizes, embedding_size):
    params = []
    for i, k in enumerate(kernel_sizes):
        kw, kb = jax.random.split(jax.random.fold_in(key, i))
        fan_in = in_channels * k
        w = jax.random.normal(kw, (embedding_size, in_channels, k), jnp.float32) / np.sqrt(fan_in)
        b = 0.1 * jax.random.normal(kb, (embedding_size,), jnp.float32)
        gamma = jnp.ones((embedding_size,), jnp.float32)   # PyTorch BN default init
        beta = jnp.zeros((embedding_size,), jnp.float32)
        stride = (k + 1) // 2
        pad = (k - 1) // 2
        params.append(dict(w=w, b=b, gamma=gamma, beta=beta, stride=stride, pad=pad))
        in_channels = embedding_size
    return params


def conv_encoder_reference(x, params):
    """Pure-JAX f32 reference with identical training-mode BN semantics."""
    for p in params:
        y = jax.lax.conv_general_dilated(
            x, p["w"], window_strides=(p["stride"],),
            padding=[(p["pad"], p["pad"])],
            dimension_numbers=("NCH", "OIH", "NCH"))
        y = y + p["b"][None, :, None]
        mean = jnp.mean(y, axis=(0, 2), keepdims=True)
        var = jnp.mean((y - mean) ** 2, axis=(0, 2), keepdims=True)
        y = (y - mean) * jax.lax.rsqrt(var + BN_EPS)
        y = y * p["gamma"][None, :, None] + p["beta"][None, :, None]
        x = jnp.maximum(y, 0.0)
    return x


if __name__ == "__main__":
    key = jax.random.PRNGKey(0)
    kx, kp = jax.random.split(key)

    # ConvEncoder(in_channels=4, kernel_size=[3, 5], embeding_size=32)
    in_channels, kernel_sizes, embedding_size = 4, [3, 5], 32
    N, L = 2, 16
    x = jax.random.normal(kx, (N, in_channels, L), jnp.float32)   # NCL like PyTorch Conv1d

    params = init_conv_encoder(kp, in_channels, kernel_sizes, embedding_size)

    forward = jax.jit(lambda xi: conv_encoder_forward(xi, params))
    out = jax.block_until_ready(forward(x))

    # Shape check: L=16 -> (k=3,s=2,p=1) -> 8 -> (k=5,s=3,p=2) -> 3
    assert out.shape == (N, embedding_size, 3), out.shape
    assert bool(jnp.all(jnp.isfinite(out)))

    ref = jax.block_until_ready(conv_encoder_reference(x, params))
    np.testing.assert_allclose(np.asarray(out), np.asarray(ref), rtol=5e-2, atol=5e-2)

    print("KERNEL_OK")
</pallas_src>

<mosaic_0001>
module attributes {stable_mosaic.version = 11 : i64} {
  func.func @_bn_relu_kernel(%arg0: i32, %arg1: memref<16x128xbf16, #tpu.memory_space<vmem>>, %arg2: memref<1x128xf32, #tpu.memory_space<vmem>>, %arg3: memref<1x128xf32, #tpu.memory_space<vmem>>, %arg4: memref<16x128xbf16, #tpu.memory_space<vmem>>) attributes {dimension_semantics = [#tpu.dimension_semantics<parallel>], iteration_bounds = array<i64: 1>, scalar_prefetch = 0 : i64, scratch_operands = 0 : i64, tpu.core_type = #tpu.core_type<tc>, window_params = [{transform_indices = @transform_0, window_bounds = array<i64: 16, 128>}, {pipeline_mode = #tpu.pipeline_mode<synchronous>, transform_indices = @transform_1, window_bounds = array<i64: 1, 128>}, {pipeline_mode = #tpu.pipeline_mode<synchronous>, transform_indices = @transform_2, window_bounds = array<i64: 1, 128>}, {transform_indices = @transform_3, window_bounds = array<i64: 16, 128>}]} {
    %c0 = arith.constant 0 : index
    %c0_0 = arith.constant 0 : index
    %0 = vector.load %arg1[%c0, %c0_0] : memref<16x128xbf16, #tpu.memory_space<vmem>>, vector<16x128xbf16>
    %1 = arith.extf %0 : vector<16x128xbf16> to vector<16x128xf32>
    %c0_1 = arith.constant 0 : index
    %c0_2 = arith.constant 0 : index
    %2 = vector.load %arg2[%c0_1, %c0_2] : memref<1x128xf32, #tpu.memory_space<vmem>>, vector<1x128xf32>
    %3 = vector.broadcast %2 : vector<1x128xf32> to vector<16x128xf32>
    %4 = arith.mulf %1, %3 : vector<16x128xf32>
    %c0_3 = arith.constant 0 : index
    %c0_4 = arith.constant 0 : index
    %5 = vector.load %arg3[%c0_3, %c0_4] : memref<1x128xf32, #tpu.memory_space<vmem>>, vector<1x128xf32>
    %6 = vector.broadcast %5 : vector<1x128xf32> to vector<16x128xf32>
    %7 = arith.addf %4, %6 : vector<16x128xf32>
    %cst = arith.constant 0.000000e+00 : f32
    %8 = vector.broadcast %cst : f32 to vector<16x128xf32>
    %9 = arith.maximumf %7, %8 : vector<16x128xf32>
    %10 = arith.truncf %9 : vector<16x128xf32> to vector<16x128xbf16>
    %c0_5 = arith.constant 0 : index
    %c0_6 = arith.constant 0 : index
    %11 = vector.load %arg4[%c0_5, %c0_6] : memref<16x128xbf16, #tpu.memory_space<vmem>>, vector<16x128xbf16>
    tpu.vector_store %arg4[%c0_5, %c0_6], %10 {strides = array<i32>} : memref<16x128xbf16, #tpu.memory_space<vmem>>, vector<16x128xbf16>,
    return
  }
  func.func @transform_0(%arg0: i32) -> (i32, i32) {
    %c0_i32 = arith.constant 0 : i32
    %c0_i32_0 = arith.constant 0 : i32
    return %arg0, %c0_i32 : i32, i32
  }
  func.func @transform_1(%arg0: i32) -> (i32, i32) {
    %c0_i32 = arith.constant 0 : i32
    %c0_i32_0 = arith.constant 0 : i32
    %c0_i32_1 = arith.constant 0 : i32
    return %c0_i32, %c0_i32_0 : i32, i32
  }
  func.func @transform_2(%arg0: i32) -> (i32, i32) {
    %c0_i32 = arith.constant 0 : i32
    %c0_i32_0 = arith.constant 0 : i32
    %c0_i32_1 = arith.constant 0 : i32
    return %c0_i32, %c0_i32_0 : i32, i32
  }
  func.func @transform_3(%arg0: i32) -> (i32, i32) {
    %c0_i32 = arith.constant 0 : i32
    %c0_i32_0 = arith.constant 0 : i32
    return %arg0, %c0_i32 : i32, i32
  }
}

module attributes {stable_mosaic.version = 11 : i64} {
  func.func @kernel(%arg0: i32, %arg1: memref<16x12xbf16, #tpu.memory_space<vmem>>, %arg2: memref<12x128xbf16, #tpu.memory_space<vmem>>, %arg3: memref<1x128xf32, #tpu.memory_space<vmem>>, %arg4: memref<16x128xbf16, #tpu.memory_space<vmem>>, %arg5: memref<8x128xf32, #tpu.memory_space<vmem>>) attributes {dimension_semantics = [#tpu.dimension_semantics<parallel>], iteration_bounds = array<i64: 1>, scalar_prefetch = 0 : i64, scratch_operands = 0 : i64, tpu.core_type = #tpu.core_type<tc>, window_params = [{transform_indices = @transform_0, window_bounds = array<i64: 16, 12>}, {pipeline_mode = #tpu.pipeline_mode<synchronous>, transform_indices = @transform_1, window_bounds = array<i64: 12, 128>}, {pipeline_mode = #tpu.pipeline_mode<synchronous>, transform_indices = @transform_2, window_bounds = array<i64: 1, 128>}, {transform_indices = @transform_3, window_bounds = array<i64: 16, 128>}, {transform_indices = @transform_4, window_bounds = array<i64: 8, 128>}]} {
    %c0 = arith.constant 0 : index
    %c0_0 = arith.constant 0 : index
    %0 = vector.load %arg1[%c0, %c0_0] : memref<16x12xbf16, #tpu.memory_space<vmem>>, vector<16x12xbf16>
    %c0_1 = arith.constant 0 : index
    %c0_2 = arith.constant 0 : index
    %1 = vector.load %arg2[%c0_1, %c0_2] : memref<12x128xbf16, #tpu.memory_space<vmem>>, vector<12x128xbf16>
    %cst = arith.constant dense<0.000000e+00> : vector<16x128xf32>
    %2 = tpu.matmul %0, %1, %cst {dimension_numbers = #tpu.dot_dimension_numbers<[1], [0], [0], [1], [0, 0, 1, 1], [], []>} : vector<16x12xbf16>, vector<12x128xbf16>, vector<16x128xf32> -> vector<16x128xf32>
    %c0_3 = arith.constant 0 : index
    %c0_4 = arith.constant 0 : index
    %3 = vector.load %arg3[%c0_3, %c0_4] : memref<1x128xf32, #tpu.memory_space<vmem>>, vector<1x128xf32>
    %4 = vector.broadcast %3 : vector<1x128xf32> to vector<16x128xf32>
    %5 = arith.addf %2, %4 : vector<16x128xf32>
    %6 = arith.truncf %5 : vector<16x128xf32> to vector<16x128xbf16>
    %c0_5 = arith.constant 0 : index
    %c0_6 = arith.constant 0 : index
    %7 = vector.load %arg4[%c0_5, %c0_6] : memref<16x128xbf16, #tpu.memory_space<vmem>>, vector<16x128xbf16>
    tpu.vector_store %arg4[%c0_5, %c0_6], %6 {strides = array<i32>} : memref<16x128xbf16, #tpu.memory_space<vmem>>, vector<16x128xbf16>,
    %c16_i32 = arith.constant 16 : i32
    %8 = arith.muli %arg0, %c16_i32 : i32
    %9 = tpu.iota {dimensions = array<i32: 0>} : vector<16x1xi32>
    %10 = vector.broadcast %8 : i32 to vector<16x1xi32>
    %11 = arith.addi %10, %9 : vector<16x1xi32>
    %c16_i32_7 = arith.constant 16 : i32
    %12 = vector.broadcast %c16_i32_7 : i32 to vector<16x1xi32>
    %13 = arith.cmpi slt, %11, %12 : vector<16x1xi32>
    %14 = arith.extui %13 : vector<16x1xi1> to vector<16x1xi32>
    %15 = arith.sitofp %14 : vector<16x1xi32> to vector<16x1xf32>
    %16 = vector.broadcast %15 : vector<16x1xf32> to vector<16x128xf32>
    %17 = arith.mulf %5, %16 : vector<16x128xf32>
    %cst_8 = arith.constant dense<0.000000e+00> : vector<128xf32>
    %18 = vector.multi_reduction <add>, %17, %cst_8 [0] : vector<16x128xf32> to vector<128xf32>
    %19 = vector.shape_cast %18 : vector<128xf32> to vector<1x128xf32>
    %20 = arith.mulf %17, %5 : vector<16x128xf32>
    %cst_9 = arith.constant dense<0.000000e+00> : vector<128xf32>
    %21 = vector.multi_reduction <add>, %20, %cst_9 [0] : vector<16x128xf32> to vector<128xf32>
    %22 = vector.shape_cast %21 : vector<128xf32> to vector<1x128xf32>
    %cst_10 = arith.constant 0.000000e+00 : f32
    %23 = vector.broadcast %cst_10 : f32 to vector<6x128xf32>
    %24 = tpu.concatenate %19, %22, %23 in 0 : vector<1x128xf32>, vector<1x128xf32>, vector<6x128xf32> -> vector<8x128xf32>
    %c0_11 = arith.constant 0 : index
    %c0_12 = arith.constant 0 : index
    %25 = vector.load %arg5[%c0_11, %c0_12] : memref<8x128xf32, #tpu.memory_space<vmem>>, vector<8x128xf32>
    tpu.vector_store %arg5[%c0_11, %c0_12], %24 {strides = array<i32>} : memref<8x128xf32, #tpu.memory_space<vmem>>, vector<8x128xf32>,
    return
  }
  func.func @transform_0(%arg0: i32) -> (i32, i32) {
    %c0_i32 = arith.constant 0 : i32
    %c0_i32_0 = arith.constant 0 : i32
    return %arg0, %c0_i32 : i32, i32
  }
  func.func @transform_1(%arg0: i32) -> (i32, i32) {
    %c0_i32 = arith.constant 0 : i32
    %c0_i32_0 = arith.constant 0 : i32
    %c0_i32_1 = arith.constant 0 : i32
    return %c0_i32, %c0_i32_0 : i32, i32
  }
  func.func @transform_2(%arg0: i32) -> (i32, i32) {
    %c0_i32 = arith.constant 0 : i32
    %c0_i32_0 = arith.constant 0 : i32
    %c0_i32_1 = arith.constant 0 : i32
    return %c0_i32, %c0_i32_0 : i32, i32
  }
  func.func @transform_3(%arg0: i32) -> (i32, i32) {
    %c0_i32 = arith.constant 0 : i32
    %c0_i32_0 = arith.constant 0 : i32
    return %arg0, %c0_i32 : i32, i32
  }
  func.func @transform_4(%arg0: i32) -> (i32, i32) {
    %c0_i32 = arith.constant 0 : i32
    %c0_i32_0 = arith.constant 0 : i32
    return %arg0, %c0_i32 : i32, i32
  }
}

module attributes {stable_mosaic.version = 11 : i64} {
  func.func @kernel(%arg0: i32, %arg1: memref<8x160xbf16, #tpu.memory_space<vmem>>, %arg2: memref<160x128xbf16, #tpu.memory_space<vmem>>, %arg3: memref<1x128xf32, #tpu.memory_space<vmem>>, %arg4: memref<8x128xbf16, #tpu.memory_space<vmem>>, %arg5: memref<8x128xf32, #tpu.memory_space<vmem>>) attributes {dimension_semantics = [#tpu.dimension_semantics<parallel>], iteration_bounds = array<i64: 1>, scalar_prefetch = 0 : i64, scratch_operands = 0 : i64, tpu.core_type = #tpu.core_type<tc>, window_params = [{transform_indices = @transform_0, window_bounds = array<i64: 8, 160>}, {pipeline_mode = #tpu.pipeline_mode<synchronous>, transform_indices = @transform_1, window_bounds = array<i64: 160, 128>}, {pipeline_mode = #tpu.pipeline_mode<synchronous>, transform_indices = @transform_2, window_bounds = array<i64: 1, 128>}, {transform_indices = @transform_3, window_bounds = array<i64: 8, 128>}, {transform_indices = @transform_4, window_bounds = array<i64: 8, 128>}]} {
    %c0 = arith.constant 0 : index
    %c0_0 = arith.constant 0 : index
    %0 = vector.load %arg1[%c0, %c0_0] : memref<8x160xbf16, #tpu.memory_space<vmem>>, vector<8x160xbf16>
    %c0_1 = arith.constant 0 : index
    %c0_2 = arith.constant 0 : index
    %1 = vector.load %arg2[%c0_1, %c0_2] : memref<160x128xbf16, #tpu.memory_space<vmem>>, vector<160x128xbf16>
    %cst = arith.constant dense<0.000000e+00> : vector<8x128xf32>
    %2 = tpu.matmul %0, %1, %cst {dimension_numbers = #tpu.dot_dimension_numbers<[1], [0], [0], [1], [0, 0, 1, 1], [], []>} : vector<8x160xbf16>, vector<160x128xbf16>, vector<8x128xf32> -> vector<8x128xf32>
    %c0_3 = arith.constant 0 : index
    %c0_4 = arith.constant 0 : index
    %3 = vector.load %arg3[%c0_3, %c0_4] : memref<1x128xf32, #tpu.memory_space<vmem>>, vector<1x128xf32>
    %4 = vector.broadcast %3 : vector<1x128xf32> to vector<8x128xf32>
    %5 = arith.addf %2, %4 : vector<8x128xf32>
    %6 = arith.truncf %5 : vector<8x128xf32> to vector<8x128xbf16>
    %c0_5 = arith.constant 0 : index
    %c0_6 = arith.constant 0 : index
    %7 = vector.load %arg4[%c0_5, %c0_6] : memref<8x128xbf16, #tpu.memory_space<vmem>>, vector<8x128xbf16>
    tpu.vector_store %arg4[%c0_5, %c0_6], %6 {strides = array<i32>} : memref<8x128xbf16, #tpu.memory_space<vmem>>, vector<8x128xbf16>,
    %c8_i32 = arith.constant 8 : i32
    %8 = arith.muli %arg0, %c8_i32 : i32
    %9 = tpu.iota {dimensions = array<i32: 0>} : vector<8x1xi32>
    %10 = vector.broadcast %8 : i32 to vector<8x1xi32>
    %11 = arith.addi %10, %9 : vector<8x1xi32>
    %c6_i32 = arith.constant 6 : i32
    %12 = vector.broadcast %c6_i32 : i32 to vector<8x1xi32>
    %13 = arith.cmpi slt, %11, %12 : vector<8x1xi32>
    %14 = arith.extui %13 : vector<8x1xi1> to vector<8x1xi32>
    %15 = arith.sitofp %14 : vector<8x1xi32> to vector<8x1xf32>
    %16 = vector.broadcast %15 : vector<8x1xf32> to vector<8x128xf32>
    %17 = arith.mulf %5, %16 : vector<8x128xf32>
    %cst_7 = arith.constant dense<0.000000e+00> : vector<128xf32>
    %18 = vector.multi_reduction <add>, %17, %cst_7 [0] : vector<8x128xf32> to vector<128xf32>
    %19 = vector.shape_cast %18 : vector<128xf32> to vector<1x128xf32>
    %20 = arith.mulf %17, %5 : vector<8x128xf32>
    %cst_8 = arith.constant dense<0.000000e+00> : vector<128xf32>
    %21 = vector.multi_reduction <add>, %20, %cst_8 [0] : vector<8x128xf32> to vector<128xf32>
    %22 = vector.shape_cast %21 : vector<128xf32> to vector<1x128xf32>
    %cst_9 = arith.constant 0.000000e+00 : f32
    %23 = vector.broadcast %cst_9 : f32 to vector<6x128xf32>
    %24 = tpu.concatenate %19, %22, %23 in 0 : vector<1x128xf32>, vector<1x128xf32>, vector<6x128xf32> -> vector<8x128xf32>
    %c0_10 = arith.constant 0 : index
    %c0_11 = arith.constant 0 : index
    %25 = vector.load %arg5[%c0_10, %c0_11] : memref<8x128xf32, #tpu.memory_space<vmem>>, vector<8x128xf32>
    tpu.vector_store %arg5[%c0_10, %c0_11], %24 {strides = array<i32>} : memref<8x128xf32, #tpu.memory_space<vmem>>, vector<8x128xf32>,
    return
  }
  func.func @transform_0(%arg0: i32) -> (i32, i32) {
    %c0_i32 = arith.constant 0 : i32
    %c0_i32_0 = arith.constant 0 : i32
    return %arg0, %c0_i32 : i32, i32
  }
  func.func @transform_1(%arg0: i32) -> (i32, i32) {
    %c0_i32 = arith.constant 0 : i32
    %c0_i32_0 = arith.constant 0 : i32
    %c0_i32_1 = arith.constant 0 : i32
    return %c0_i32, %c0_i32_0 : i32, i32
  }
  func.func @transform_2(%arg0: i32) -> (i32, i32) {
    %c0_i32 = arith.constant 0 : i32
    %c0_i32_0 = arith.constant 0 : i32
    %c0_i32_1 = arith.constant 0 : i32
    return %c0_i32, %c0_i32_0 : i32, i32
  }
  func.func @transform_3(%arg0: i32) -> (i32, i32) {
    %c0_i32 = arith.constant 0 : i32
    %c0_i32_0 = arith.constant 0 : i32
    return %arg0, %c0_i32 : i32, i32
  }
  func.func @transform_4(%arg0: i32) -> (i32, i32) {
    %c0_i32 = arith.constant 0 : i32
    %c0_i32_0 = arith.constant 0 : i32
    return %arg0, %c0_i32 : i32, i32
  }
}

module attributes {stable_mosaic.version = 11 : i64} {
  func.func @_bn_relu_kernel(%arg0: i32, %arg1: memref<8x128xbf16, #tpu.memory_space<vmem>>, %arg2: memref<1x128xf32, #tpu.memory_space<vmem>>, %arg3: memref<1x128xf32, #tpu.memory_space<vmem>>, %arg4: memref<8x128xf32, #tpu.memory_space<vmem>>) attributes {dimension_semantics = [#tpu.dimension_semantics<parallel>], iteration_bounds = array<i64: 1>, scalar_prefetch = 0 : i64, scratch_operands = 0 : i64, tpu.core_type = #tpu.core_type<tc>, window_params = [{transform_indices = @transform_0, window_bounds = array<i64: 8, 128>}, {pipeline_mode = #tpu.pipeline_mode<synchronous>, transform_indices = @transform_1, window_bounds = array<i64: 1, 128>}, {pipeline_mode = #tpu.pipeline_mode<synchronous>, transform_indices = @transform_2, window_bounds = array<i64: 1, 128>}, {transform_indices = @transform_3, window_bounds = array<i64: 8, 128>}]} {
    %c0 = arith.constant 0 : index
    %c0_0 = arith.constant 0 : index
    %0 = vector.load %arg1[%c0, %c0_0] : memref<8x128xbf16, #tpu.memory_space<vmem>>, vector<8x128xbf16>
    %1 = arith.extf %0 : vector<8x128xbf16> to vector<8x128xf32>
    %c0_1 = arith.constant 0 : index
    %c0_2 = arith.constant 0 : index
    %2 = vector.load %arg2[%c0_1, %c0_2] : memref<1x128xf32, #tpu.memory_space<vmem>>, vector<1x128xf32>
    %3 = vector.broadcast %2 : vector<1x128xf32> to vector<8x128xf32>
    %4 = arith.mulf %1, %3 : vector<8x128xf32>
    %c0_3 = arith.constant 0 : index
    %c0_4 = arith.constant 0 : index
    %5 = vector.load %arg3[%c0_3, %c0_4] : memref<1x128xf32, #tpu.memory_space<vmem>>, vector<1x128xf32>
    %6 = vector.broadcast %5 : vector<1x128xf32> to vector<8x128xf32>
    %7 = arith.addf %4, %6 : vector<8x128xf32>
    %cst = arith.constant 0.000000e+00 : f32
    %8 = vector.broadcast %cst : f32 to vector<8x128xf32>
    %9 = arith.maximumf %7, %8 : vector<8x128xf32>
    %c0_5 = arith.constant 0 : index
    %c0_6 = arith.constant 0 : index
    %10 = vector.load %arg4[%c0_5, %c0_6] : memref<8x128xf32, #tpu.memory_space<vmem>>, vector<8x128xf32>
    tpu.vector_store %arg4[%c0_5, %c0_6], %9 {strides = array<i32>} : memref<8x128xf32, #tpu.memory_space<vmem>>, vector<8x128xf32>,
    return
  }
  func.func @transform_0(%arg0: i32) -> (i32, i32) {
    %c0_i32 = arith.constant 0 : i32
    %c0_i32_0 = arith.constant 0 : i32
    return %arg0, %c0_i32 : i32, i32
  }
  func.func @transform_1(%arg0: i32) -> (i32, i32) {
    %c0_i32 = arith.constant 0 : i32
    %c0_i32_0 = arith.constant 0 : i32
    %c0_i32_1 = arith.constant 0 : i32
    return %c0_i32, %c0_i32_0 : i32, i32
  }
  func.func @transform_2(%arg0: i32) -> (i32, i32) {
    %c0_i32 = arith.constant 0 : i32
    %c0_i32_0 = arith.constant 0 : i32
    %c0_i32_1 = arith.constant 0 : i32
    return %c0_i32, %c0_i32_0 : i32, i32
  }
  func.func @transform_3(%arg0: i32) -> (i32, i32) {
    %c0_i32 = arith.constant 0 : i32
    %c0_i32_0 = arith.constant 0 : i32
    return %arg0, %c0_i32 : i32, i32
  }
}

</mosaic_0001>

<bundles_post_ra>
// kernel: _lambda_.5
= control target key start
LH: loop header
LB: loop body
LE: loop exit
PB: predicated region body
PF: predicated region fallthrough
CT: control target
= control target key end

     0   :  { %s99_s0 = inlined_call_operand.vmem [shape: bf16[16,128], index: 0, kind: input, shape index: {}]   ;;  %s100_s1 = inlined_call_operand.vmem [shape: f32[1,128], index: 1, kind: input, shape index: {}]   ;;  %s101_s2 = inlined_call_operand.vmem [shape: f32[1,128], index: 2, kind: input, shape index: {}]   ;;  %s102_s3 = inlined_call_operand.vmem [shape: bf16[16,128], index: 3, kind: output, shape index: {}]  }
   0x1   :  { %v59_v0 = vld [vmem:[%s99_s0] sm:$0xff]  }
   0x2   :  { %v52_v1 = vld [vmem:[%s100_s1] ss:$0 sm:$0xff]  ;;  %v60_v2 = vunpack.c.l.bf16 %v59_v0  ;;  %v61_v3 = vunpack.c.h.bf16 %v59_v0 }
   0x3   :  { %v53_v4 = vld [vmem:[%s101_s2] ss:$0 sm:$0xff] }
   0x4   :  { %v25_v5 = vmul.f32 %v60_v2, %v52_v1  ;;  %v26_v6 = vmul.f32 %v61_v3, %v52_v1 }
   0x6   :  { %v34_v7 = vadd.f32 %v53_v4, %v25_v5  ;;  %v35_v8 = vadd.f32 %v53_v4, %v26_v6 }
   0x8   :  { %v36_v9 = vmax.f32 %v34_v7, 0.0  ;;  %v37_v10 = vmax.f32 %v35_v8, 0.0 }
   0xa   :  { %v65_v11 = vpack.c.bf16 %v37_v10, %v36_v9 }
   0xc   :  { %66 = vst [vmem:[%s102_s3] sm:$0xff] %v65_v11  }

// kernel: _lambda_.4
= control target key start
LH: loop header
LB: loop body
LE: loop exit
PB: predicated region body
PF: predicated region fallthrough
CT: control target
= control target key end

     0   :  { %vm42_vm0 = vcmask 1045504   ;;  %v166_v0 = vmov 0.0   ;;  %vm167_vm1 = vmmov 0   ;;  %vm38_vm2 = vcmask 97280   ;;  %s208_s1 = inlined_call_operand.vmem [shape: bf16[12,128], index: 1, kind: input, shape index: {}]   ;;  %s209_s0 = inlined_call_operand.vmem [shape: bf16[16,12], index: 0, kind: input, shape index: {}]   ;;  %s210_s2 = inlined_call_operand.vmem [shape: f32[1,128], index: 2, kind: input, shape index: {}]   ;;  %s211_s3 = inlined_call_operand.vmem [shape: bf16[16,128], index: 3, kind: output, shape index: {0}]   ;;  %s212_s4 = inlined_call_operand.vmem [shape: f32[8,128], index: 4, kind: output, shape index: {1}]  }
   0x1   :  { %156 = vmatprep.subr.bf16.mxu0 %v166_v0  ;;  %v164_v1 = vld [vmem:[%s208_s1] sm:$0x3f]   ;;  %158 = vmatprep.mubr.msk.bf16.mxu0 %vm167_vm1, %v166_v0  ;;  %vm128_vm3 = vcmask 1040384   ;;  %vm130_vm4 = vcmask 1041408  }
   0x2   :  { %v44_v2 = vsel %vm42_vm0, %v164_v1, 0  ;;  %v165_v3 = vld [vmem:[%s209_s0] sm:$0xff]  }
   0x3   :  { %157 = vmatpush3.bf16.msra.mxu0 %v44_v2  ;;  %v141_v4 = vld [vmem:[%s210_s2] ss:$0 sm:$0xff] }
   0x6   :  { %159 = vmatmul.mubr.msk.bf16.vlgmr.msra.gmra.mxu0 %vm38_vm2, %v165_v3 }
  0xc6   :  { %v80_v5 = vpop.f32.mrf.mxu0 }
  0xc7   :  { %v81_v7 = vadd.f32 %v141_v4, %v80_v5 }
  0xc8   :  { %v160_v6 = vpop.f32.mrf.mxu0 }
  0xc9   :  { %v119_v11 = vmul.f32 %v81_v7, %v81_v7 }
  0xca   :  { %v83_v8 = vpop.f32.mrf.mxu0 }
  0xcb   :  { %v84_v9 = vadd.f32 %v141_v4, %v83_v8 }
  0xcc   :  { %v161_v10 = vpop.f32.mrf.mxu0 }
  0xcd   :  { %v152_v12 = vpack.c.bf16 %v84_v9, %v81_v7  ;;  %v112_v13 = vadd.f32 %v84_v9, %v81_v7  ;;  %v120_v14 = vmul.f32 %v84_v9, %v84_v9 }
  0xcf   :  { %153 = vst [vmem:[%s211_s3] sm:$0xff] %v152_v12   ;;  %v113_v15 = vrot.slane %v112_v13, 4  ;;  %v121_v16 = vadd.f32 %v120_v14, %v119_v11 }
  0xd1   :  { %v114_v17 = vadd.f32 %v113_v15, %v112_v13  ;;  %v122_v18 = vrot.slane %v121_v16, 4 }
  0xd3   :  { %v115_v19 = vrot.slane %v114_v17, 2  ;;  %v123_v20 = vadd.f32 %v122_v18, %v121_v16 }
  0xd5   :  { %v116_v21 = vadd.f32 %v115_v19, %v114_v17  ;;  %v124_v22 = vrot.slane %v123_v20, 2 }
  0xd7   :  { %v117_v23 = vrot.slane %v116_v21, 1  ;;  %v125_v24 = vadd.f32 %v124_v22, %v123_v20 }
  0xd9   :  { %v126_v25 = vrot.slane %v125_v24, 1  ;;  %v118_v26 = vadd.f32 %v117_v23, %v116_v21 }
  0xdb   :  { %v127_v27 = vadd.f32 %v126_v25, %v125_v24 }
  0xdd   :  { %v129_v28 = vsel %vm128_vm3, %v118_v26, %v127_v27 }
  0xde   :  { %v131_v29 = vsel %vm130_vm4, %v129_v28, 0.0 }
  0xdf   :  { %132 = vst [vmem:[%s212_s4] sm:$0xff] %v131_v29 }

// kernel: _lambda_.7
= control target key start
LH: loop header
LB: loop body
LE: loop exit
PB: predicated region body
PF: predicated region fallthrough
CT: control target
= control target key end

     0   :  { %s72_s0 = inlined_call_operand.vmem [shape: bf16[8,128], index: 0, kind: input, shape index: {}]   ;;  %s73_s1 = inlined_call_operand.vmem [shape: f32[1,128], index: 1, kind: input, shape index: {}]   ;;  %s74_s2 = inlined_call_operand.vmem [shape: f32[1,128], index: 2, kind: input, shape index: {}]   ;;  %s75_s3 = inlined_call_operand.vmem [shape: f32[8,128], index: 3, kind: output, shape index: {}]  }
   0x1   :  { %v14_v0 = vld [vmem:[%s72_s0] sm:$0xf] }
   0x2   :  { %v38_v1 = vld [vmem:[%s73_s1] ss:$0 sm:$0xff]  ;;  %v15_v2 = vunpack.c.l.bf16 %v14_v0 }
   0x3   :  { %v39_v3 = vld [vmem:[%s74_s2] ss:$0 sm:$0xff] }
   0x4   :  { %v23_v4 = vmul.f32 %v38_v1, %v15_v2 }
   0x6   :  { %v31_v5 = vadd.f32 %v39_v3, %v23_v4 }
   0x8   :  { %v32_v6 = vmax.f32 %v31_v5, 0.0 }
   0xa   :  { %33 = vst [vmem:[%s75_s3] sm:$0xff] %v32_v6 }

// kernel: _lambda_.6
= control target key start
LH: loop header
LB: loop body
LE: loop exit
PB: predicated region body
PF: predicated region fallthrough
CT: control target
= control target key end

     0   :  { %v221_v0 = vmov 0   ;;  %vm111_vm0 = vcmask 261120   ;;  %v158_v14 = vlaneseq  ;;  %v222_v18 = vmov 0.0   ;;  %s290_s1 = inlined_call_operand.vmem [shape: bf16[160,128], index: 1, kind: input, shape index: {}]   ;;  %s291_s0 = inlined_call_operand.vmem [shape: bf16[8,160], index: 0, kind: input, shape index: {}]   ;;  %s292_s2 = inlined_call_operand.vmem [shape: f32[1,128], index: 2, kind: input, shape index: {}]   ;;  %s293_s3 = inlined_call_operand.vmem [shape: bf16[8,128], index: 3, kind: output, shape index: {0}]   ;;  %s294_s4 = inlined_call_operand.vmem [shape: f32[8,128], index: 4, kind: output, shape index: {1}]  }
   0x1   :  { %115 = vmatprep.subr.bf16.mxu0 %v221_v0  ;;  %v209_v1 = vld [vmem:[%s290_s1 + $0x38] sm:$0xff]   ;;  %v210_v2 = vld [vmem:[%s290_s1 + $0x30] sm:$0xff]   ;;  %v211_v3 = vld [vmem:[%s290_s1 + $0x28] sm:$0xff]   ;;  %vm179_vm2 = vcmask 1040384   ;;  %vm181_vm3 = vcmask 1041408  }
   0x2   :  { %116 = vmatpush1.bf16.msra.mxu0 %v209_v1  ;;  %v212_v4 = vld [vmem:[%s290_s1 + $0x20] sm:$0xff]   ;;  %v213_v7 = vld [vmem:[%s290_s1 + $0x18] sm:$0xff]   ;;  %v214_v8 = vld [vmem:[%s290_s1 + $0x10] sm:$0xff]   ;;  %v159_v15 = vshrl.u32 %v158_v14, 7 }
   0x3   :  { %117 = vmatprep.subr.bf16.mxu0 %v221_v0  ;;  %v17_v5 = vld [vmem:[%s291_s0] sm:$0xff]  ;;  %v215_v9 = vld [vmem:[%s290_s1 + $0x8] sm:$0xff]  }
   0x4   :  { %v194_v6 = vcombine.high %v17_v5, %v17_v5  ;;  %v216_v10 = vld [vmem:[%s290_s1] sm:$0xff]   ;;  %v217_v11 = vld [vmem:[%s290_s1 + $0x48] sm:$0xff]   ;;  %v193_v13 = vcombine.low %v17_v5, %v17_v5  ;;  %vm162_vm1 = vcmp.lt.s32.totalorder %v159_v15, 6 }
   0x5   :  { %v218_v12 = vld [vmem:[%s290_s1 + $0x40] sm:$0xff]   ;;  %v206_v19 = vsel %vm162_vm1, 1.0, %v222_v18 }
   0x6   :  { %118 = vmatpush1.bf16.msra.mxu0 %v210_v2  ;;  %205 = vmatprep.mubr.msk.bf16.mxu0 %vm111_vm0, %v194_v6  ;;  %v192_v16 = vld [vmem:[%s292_s2] ss:$0 sm:$0xff] }
   0x7   :  { %119 = vmatprep.subr.bf16.mxu0 %v221_v0 }
   0xa   :  { %120 = vmatpush1.bf16.msra.mxu0 %v211_v3 }
   0xb   :  { %121 = vmatprep.subr.bf16.mxu0 %v221_v0 }
   0xe   :  { %122 = vmatpush1.bf16.msra.mxu0 %v212_v4 }
   0xf   :  { %123 = vmatprep.subr.bf16.mxu0 %v221_v0 }
  0x12   :  { %124 = vmatpush1.bf16.msra.mxu0 %v213_v7 }
  0x13   :  { %125 = vmatprep.subr.bf16.mxu0 %v221_v0 }
  0x16   :  { %126 = vmatpush1.bf16.msra.mxu0 %v214_v8 }
  0x17   :  { %127 = vmatprep.subr.bf16.mxu0 %v221_v0 }
  0x1a   :  { %128 = vmatpush1.bf16.msra.mxu0 %v215_v9 }
  0x1b   :  { %129 = vmatprep.subr.bf16.mxu0 %v221_v0 }
  0x1e   :  { %130 = vmatpush1.bf16.msra.mxu0 %v216_v10 }
  0x1f   :  { %143 = vmatprep.subr.bf16.mxu0 %v221_v0 }
  0x22   :  { %144 = vmatpush2.bf16.msra.mxu0 %v217_v11 }
  0x23   :  { %145 = vmatprep.subr.bf16.mxu0 %v221_v0 }
  0x26   :  { %146 = vmatpush2.bf16.msra.mxu0 %v218_v12 }
  0x29   :  { %148 = vmatmul.mubr.bf16.vlgmr.msra.gmra.mxu0 %v193_v13 }
  0xe9   :  { %v149_v17 = vpop.f32.mrf.mxu0 }
  0xea   :  { %v150_v20 = vadd.f32 %v192_v16, %v149_v17 }
  0xeb   :  { %v151_v21 = vpop.f32.mrf.mxu0 }
  0xec   :  { %v155_v22 = vpack.c.bf16 %v150_v20, %v150_v20  ;;  %v165_v23 = vmul.f32 %v206_v19, %v150_v20 }
  0xed   :  { %v152_v24 = vpop.f32.mrf.mxu0 }
  0xee   :  { %156 = vst [vmem:[%s293_s3] sm:$0xf] %v155_v22  ;;  %v166_v25 = vrot.slane %v165_v23, 4  ;;  %v172_v26 = vmul.f32 %v165_v23, %v150_v20 }
  0xef   :  { %v153_v27 = vpop.f32.mrf.mxu0 }
  0xf0   :  { %v167_v28 = vadd.f32 %v166_v25, %v165_v23  ;;  %v173_v29 = vrot.slane %v172_v26, 4 }
  0xf2   :  { %v168_v30 = vrot.slane %v167_v28, 2  ;;  %v174_v31 = vadd.f32 %v173_v29, %v172_v26 }
  0xf4   :  { %v169_v32 = vadd.f32 %v168_v30, %v167_v28  ;;  %v175_v33 = vrot.slane %v174_v31, 2 }
  0xf6   :  { %v170_v34 = vrot.slane %v169_v32, 1  ;;  %v176_v35 = vadd.f32 %v175_v33, %v174_v31 }
  0xf8   :  { %v177_v36 = vrot.slane %v176_v35, 1  ;;  %v171_v37 = vadd.f32 %v170_v34, %v169_v32 }
  0xfa   :  { %v178_v38 = vadd.f32 %v177_v36, %v176_v35 }
  0xfc   :  { %v180_v39 = vsel %vm179_vm2, %v171_v37, %v178_v38 }
  0xfd   :  { %v182_v40 = vsel %vm181_vm3, %v180_v39, 0.0 }
  0xfe   :  { %183 = vst [vmem:[%s294_s4] sm:$0xff] %v182_v40 }

</bundles_post_ra>
